<compile_context>
chip_gen: v7x
topology: tpu7x:2x2x1
jax: 0.10.0
libtpu: 0.0.40
codegen_flags: <defaults>
</compile_context>

<pallas_src>
from functools import partial

import jax
import jax.numpy as jnp
from jax import lax
from jax.experimental import pallas as pl
from jax.experimental.pallas import tpu as pltpu  # noqa: F401  (kept for parity)

# ---------------- problem sizes (small, consistent with the forward) --------
B, CH, H, W = 2, 4, 16, 16          # im: (b, ch, h, w) NCHW
F = H * W * CH                      # flattened feature size = 1024
N_PRED = 24                         # number of detection rows
NC = 3                              # synthetic number of classes
NO = 5 + NC                         # per-prediction vector: x,y,w,h,obj,cls...
N_OUT = N_PRED * NO                 # true flattened output width = 192
N_OUT_PAD = 256                     # lane-padded output width (multiple of 128)

# ---------------- synthetic TFLite quantization params (deterministic) ------
IN_SCALE, IN_ZP = 1.0 / 255.0, 0.0      # input['quantization']
OUT_SCALE, OUT_ZP = 0.02, 128.0         # output['quantization']
REQ_SCALE = 1.0e-3                       # internal requant of the synthetic head


def prepare_head_weights(head_w_nhwc):
    """One-time (module-init) weight prep, hoisted out of the per-call path.

    head_w_nhwc: (F, N_OUT) float32, rows in NHWC-flattened feature order.

    Folds REQ_SCALE, permutes rows to NCHW-flattened feature order (so the
    runtime activation transpose disappears), zero-pads the output columns to
    N_OUT_PAD lanes, and casts to bf16 for the MXU.
    """
    w = head_w_nhwc.astype(jnp.float32) * REQ_SCALE
    # rows indexed (h, w, c) -> reindex to (c, h, w)
    w = w.reshape(H, W, CH, N_OUT).transpose(2, 0, 1, 3).reshape(F, N_OUT)
    w = jnp.pad(w, ((0, 0), (0, N_OUT_PAD - N_OUT)))
    return w.astype(jnp.bfloat16)


@partial(jax.jit, static_argnames=("val",))
def detect_multi_backend_forward(im, w_prepped, val=False):
    """Reproduces DetectMultiBackend.forward for the (int8) TFLite branch."""
    b, ch, h, w = im.shape                      # static under jit
    # Weight rows were pre-permuted to NCHW order, so flatten NCHW directly —
    # no runtime permute(0, 2, 3, 1) round-trip through HBM.
    x = im.reshape(b, ch * h * w).astype(jnp.float32)

    box_w, box_h = float(w), float(h)

    def detect_kernel(x_ref, w_ref, y_ref):
        """x_ref: (b, F) f32 | w_ref: (F, N_OUT_PAD) bf16 | y_ref: (b, N_OUT_PAD) f32."""
        xv = x_ref[...]

        # int8 input path of the TFLite backend:
        #   im = (im / scale + zero_point).astype(np.uint8)
        # uint8 simulated in f32 (round + clip to [0, 255]); values in [0, 255]
        # are exactly representable in bf16, so the MXU cast is lossless.
        xq = jnp.clip(jnp.round(xv * (1.0 / IN_SCALE) + IN_ZP), 0.0, 255.0)

        # Synthetic stand-in for interpreter.invoke(): bf16 linear head on the
        # MXU. REQ_SCALE is already folded into w_ref at module init.
        raw = jnp.dot(
            xq.astype(jnp.bfloat16), w_ref[...],
            preferred_element_type=jnp.float32,
        )

        # Simulated uint8 model output ...
        yq = jnp.clip(jnp.round(raw + OUT_ZP), 0.0, 255.0)

        # ... then dequant + box scaling in one multiply:
        #   y = (yq - zero_point) * scale ;  y[..., :4] *= [w, h, w, h]
        # OUT_SCALE is folded into a per-column scale vector built from iota
        # (compile-time pattern, no operand / DMA). Padded columns are zero
        # after the matmul and are sliced off in the wrapper.
        col = lax.broadcasted_iota(jnp.int32, (1, N_OUT_PAD), 1) % NO
        svec = jnp.where(
            (col == 0) | (col == 2), box_w * OUT_SCALE,
            jnp.where((col == 1) | (col == 3), box_h * OUT_SCALE, OUT_SCALE),
        )
        y_ref[...] = (yq - OUT_ZP) * svec

    # Single gridless invocation: everything resident in VMEM
    # (weights are 1024 x 256 bf16 = 512 KiB).
    y_flat = pl.pallas_call(
        detect_kernel,
        out_shape=jax.ShapeDtypeStruct((b, N_OUT_PAD), jnp.float32),
        in_specs=[
            pl.BlockSpec((b, F), lambda: (0, 0)),
            pl.BlockSpec((F, N_OUT_PAD), lambda: (0, 0)),
        ],
        out_specs=pl.BlockSpec((b, N_OUT_PAD), lambda: (0, 0)),
    )(x, w_prepped)

    y = y_flat[:, :N_OUT].reshape(b, N_PRED, NO)
    return (y, []) if val else y


if __name__ == "__main__":
    key = jax.random.PRNGKey(0)
    k_im, k_w = jax.random.split(key)

    # Deterministic example input (NCHW, like the PyTorch module expects).
    im = jax.random.uniform(k_im, (B, CH, H, W), dtype=jnp.float32)

    # Deterministic synthetic head weights (stand-in for the TFLite model),
    # given in NHWC-flattened row order like the original permuted input.
    head_w = 0.01 * jax.random.normal(k_w, (F, N_OUT), dtype=jnp.float32)

    # Module-init: one-time weight prep (fold, permute, pad, bf16 cast).
    w_prepped = jax.block_until_ready(prepare_head_weights(head_w))

    y = detect_multi_backend_forward(im, w_prepped, val=False)
    y = jax.block_until_ready(y)

    assert y.shape == (B, N_PRED, NO) and y.dtype == jnp.float32
    print("KERNEL_OK")
</pallas_src>

<mosaic_0001>
module attributes {stable_mosaic.version = 11 : i64} {
  func.func @detect_kernel(%arg0: memref<2x1024xf32, #tpu.memory_space<vmem>>, %arg1: memref<1024x256xbf16, #tpu.memory_space<vmem>>, %arg2: memref<2x256xf32, #tpu.memory_space<vmem>>) attributes {dimension_semantics = [], scalar_prefetch = 0 : i64, scratch_operands = 0 : i64, tpu.core_type = #tpu.core_type<tc>} {
    %c0 = arith.constant 0 : index
    %c0_0 = arith.constant 0 : index
    %0 = vector.load %arg0[%c0, %c0_0] : memref<2x1024xf32, #tpu.memory_space<vmem>>, vector<2x1024xf32>
    %cst = arith.constant 2.550000e+02 : f32
    %1 = vector.broadcast %cst : f32 to vector<2x1024xf32>
    %2 = arith.mulf %0, %1 : vector<2x1024xf32>
    %cst_1 = arith.constant 0.000000e+00 : f32
    %3 = vector.broadcast %cst_1 : f32 to vector<2x1024xf32>
    %4 = arith.addf %2, %3 : vector<2x1024xf32>
    %5 = math.roundeven %4 : vector<2x1024xf32>
    %cst_2 = arith.constant 0.000000e+00 : f32
    %cst_3 = arith.constant 2.550000e+02 : f32
    %6 = vector.broadcast %cst_2 : f32 to vector<2x1024xf32>
    %7 = arith.maximumf %6, %5 : vector<2x1024xf32>
    %8 = vector.broadcast %cst_3 : f32 to vector<2x1024xf32>
    %9 = arith.minimumf %8, %7 : vector<2x1024xf32>
    %10 = arith.truncf %9 : vector<2x1024xf32> to vector<2x1024xbf16>
    %c0_4 = arith.constant 0 : index
    %c0_5 = arith.constant 0 : index
    %11 = vector.load %arg1[%c0_4, %c0_5] : memref<1024x256xbf16, #tpu.memory_space<vmem>>, vector<1024x256xbf16>
    %cst_6 = arith.constant dense<0.000000e+00> : vector<2x256xf32>
    %12 = tpu.matmul %10, %11, %cst_6 {dimension_numbers = #tpu.dot_dimension_numbers<[1], [0], [0], [1], [0, 0, 1, 1], [], []>} : vector<2x1024xbf16>, vector<1024x256xbf16>, vector<2x256xf32> -> vector<2x256xf32>
    %cst_7 = arith.constant 1.280000e+02 : f32
    %13 = vector.broadcast %cst_7 : f32 to vector<2x256xf32>
    %14 = arith.addf %12, %13 : vector<2x256xf32>
    %15 = math.roundeven %14 : vector<2x256xf32>
    %cst_8 = arith.constant 0.000000e+00 : f32
    %cst_9 = arith.constant 2.550000e+02 : f32
    %16 = vector.broadcast %cst_8 : f32 to vector<2x256xf32>
    %17 = arith.maximumf %16, %15 : vector<2x256xf32>
    %18 = vector.broadcast %cst_9 : f32 to vector<2x256xf32>
    %19 = arith.minimumf %18, %17 : vector<2x256xf32>
    %20 = tpu.iota {dimensions = array<i32: 1>} : vector<1x256xi32>
    %c8_i32 = arith.constant 8 : i32
    %c0_i32 = arith.constant 0 : i32
    %21 = arith.cmpi eq, %c8_i32, %c0_i32 : i32
    %c1_i32 = arith.constant 1 : i32
    %22 = arith.select %21, %c1_i32, %c8_i32 : i32
    %23 = vector.broadcast %22 : i32 to vector<1x256xi32>
    %24 = arith.remsi %20, %23 : vector<1x256xi32>
    %c0_i32_10 = arith.constant 0 : i32
    %25 = vector.broadcast %c0_i32_10 : i32 to vector<1x256xi32>
    %26 = arith.cmpi ne, %24, %25 : vector<1x256xi32>
    %c0_i32_11 = arith.constant 0 : i32
    %27 = vector.broadcast %c0_i32_11 : i32 to vector<1x256xi32>
    %28 = arith.cmpi slt, %24, %27 : vector<1x256xi32>
    %c0_i32_12 = arith.constant 0 : i32
    %29 = arith.cmpi slt, %22, %c0_i32_12 : i32
    %30 = vector.broadcast %29 : i1 to vector<1x256xi1>
    %31 = vector.broadcast %30 : vector<1x256xi1> to vector<1x256xi1>
    %32 = arith.xori %28, %31 : vector<1x256xi1>
    %33 = arith.andi %32, %26 : vector<1x256xi1>
    %34 = vector.broadcast %22 : i32 to vector<1x256xi32>
    %35 = arith.addi %24, %34 : vector<1x256xi32>
    %36 = arith.select %33, %35, %24 : vector<1x256xi1>, vector<1x256xi32>
    %c0_i32_13 = arith.constant 0 : i32
    %37 = vector.broadcast %c0_i32_13 : i32 to vector<1x256xi32>
    %38 = arith.cmpi eq, %36, %37 : vector<1x256xi32>
    %c2_i32 = arith.constant 2 : i32
    %39 = vector.broadcast %c2_i32 : i32 to vector<1x256xi32>
    %40 = arith.cmpi eq, %36, %39 : vector<1x256xi32>
    %41 = arith.ori %38, %40 : vector<1x256xi1>
    %c1_i32_14 = arith.constant 1 : i32
    %42 = vector.broadcast %c1_i32_14 : i32 to vector<1x256xi32>
    %43 = arith.cmpi eq, %36, %42 : vector<1x256xi32>
    %c3_i32 = arith.constant 3 : i32
    %44 = vector.broadcast %c3_i32 : i32 to vector<1x256xi32>
    %45 = arith.cmpi eq, %36, %44 : vector<1x256xi32>
    %46 = arith.ori %43, %45 : vector<1x256xi1>
    %cst_15 = arith.constant 3.200000e-01 : f32
    %cst_16 = arith.constant 2.000000e-02 : f32
    %47 = vector.broadcast %cst_15 : f32 to vector<1x256xf32>
    %48 = vector.broadcast %cst_16 : f32 to vector<1x256xf32>
    %49 = arith.select %46, %47, %48 : vector<1x256xi1>, vector<1x256xf32>
    %cst_17 = arith.constant 3.200000e-01 : f32
    %50 = vector.broadcast %cst_17 : f32 to vector<1x256xf32>
    %51 = arith.select %41, %50, %49 : vector<1x256xi1>, vector<1x256xf32>
    %cst_18 = arith.constant 1.280000e+02 : f32
    %52 = vector.broadcast %cst_18 : f32 to vector<2x256xf32>
    %53 = arith.subf %19, %52 : vector<2x256xf32>
    %54 = vector.broadcast %51 : vector<1x256xf32> to vector<2x256xf32>
    %55 = arith.mulf %53, %54 : vector<2x256xf32>
    %c0_19 = arith.constant 0 : index
    %c0_20 = arith.constant 0 : index
    %56 = vector.load %arg2[%c0_19, %c0_20] : memref<2x256xf32, #tpu.memory_space<vmem>>, vector<2x256xf32>
    tpu.vector_store %arg2[%c0_19, %c0_20], %55 {strides = array<i32>} : memref<2x256xf32, #tpu.memory_space<vmem>>, vector<2x256xf32>,
    return
  }
}

</mosaic_0001>

<bundles_post_ra>
// kernel: detect_multi_backend_forward.1
= control target key start
LH: loop header
LB: loop body
LE: loop exit
PB: predicated region body
PF: predicated region fallthrough
CT: control target
= control target key end

     0   :  { %7 = vsyncpa [#allocation3], 0  ;;  %s1459_s9 = smov [#allocation2]   ;;  %s1514_s0 = inlined_call_operand.vmem [shape: f32[2,1024], index: 0, kind: input, shape index: {}]   ;;  %s1515_s1 = inlined_call_operand.hbm [shape: bf16[1024,256], index: 1, kind: input, shape index: {}]   ;;  %s1516_s2 = inlined_call_operand.vmem [shape: f32[2,256], index: 2, kind: output, shape index: {}]  }
   0x1   :  { %s15_s10 = sshll.u32 %s1459_s9, 4  ;;  %s1435_s13 = scalar_lea.hbm %s1515_s1, 16384  ;;  %s16_s10 = int_to_ptr.vmem [resolvable:$true] %s15_s10 }
   0x2   :  { %p1436_p0 = scmp.ne.s32.totalorder %s1515_s1, %s1435_s13  ;;  %p1439_p1 = scmp.lt.u32.totalorder %s1435_s13, %s1515_s1 }
   0x4   :  { %p1441_p2 = pnand %p1439_p1, %p1436_p0 }
   0x6   :  { %1444 = shalt.err (!%p1441_p2)
}
   0x7   :  { %s1445_s18 = scalar_lea.vmem %s16_s10, 16384  ;;  %p1450_p4 = scmp.lt.s32.totalorder %s16_s10, %s16_s10 }
   0x8   :  { %p1446_p3 = scmp.ne.s32.totalorder %s16_s10, %s1445_s18  ;;  %p1451_p5 = scmp.lt.s32.totalorder %s1445_s18, %s1445_s18 }
   0xa   :  { %p1452_p6 = por %p1451_p5, %p1450_p4 }
   0xc   :  { %p1453_p7 = pnand %p1452_p6, %p1446_p3 }
   0xe   :  { %1456 = shalt.err (!%p1453_p7)
}
   0xf   :  { %s1460_s19 = smov 128   ;;  %s1461_s20 = smov 8  }
  0x10   :  { %21 = dma.hbm_to_vmem [thread:$0]  %s1515_s1, 16384, %s16_s10, [#allocation3], %s1460_s19, %s1460_s19, %s1461_s20  }
  0x11   :  { %1457 = dma.done.wait [#allocation3], 16384  }
  0x12   :  { %1458 = vsyncadd [#allocation3], 4294950912  ;;  %v1243_v0 = vld [vmem:[#allocation2 + $0x4] ss:$8 sps:$4 sm:$0xff]   ;;  %v1247_v2 = vld [vmem:[#allocation2] ss:$8 sps:$4 sm:$0xff]   ;;  %v43_v46 = vlaneseq }
  0x13   :  { %v1245_v1 = vld [vmem:[#allocation2 + $0x204] ss:$8 sps:$4 sm:$0xff]   ;;  %857 = vmatprep.subr.bf16.mxu1 %v1243_v0  ;;  %v1248_v3 = vld [vmem:[#allocation2 + $0x200] ss:$8 sps:$4 sm:$0xff]   ;;  %v1249_v4 = vld [vmem:[#allocation2 + $0x14] ss:$8 sps:$4 sm:$0xff]  }
  0x14   :  { %939 = vmatprep.subr.bf16.mxu0 %v1245_v1  ;;  %858 = vmatpush1.bf16.msra.mxu1 %v1247_v2  ;;  %v1251_v5 = vld [vmem:[#allocation2 + $0x214] ss:$8 sps:$4 sm:$0xff]   ;;  %v1253_v6 = vld [vmem:[#allocation2 + $0x10] ss:$8 sps:$4 sm:$0xff]   ;;  %v1255_v8 = vld [vmem:[#allocation2 + $0x24] ss:$8 sps:$4 sm:$0xff]  }
  0x15   :  { %940 = vmatpush1.bf16.msra.mxu0 %v1248_v3  ;;  %859 = vmatprep.subr.bf16.mxu1 %v1249_v4  ;;  %v1254_v7 = vld [vmem:[#allocation2 + $0x210] ss:$8 sps:$4 sm:$0xff]   ;;  %v1257_v9 = vld [vmem:[#allocation2 + $0x224] ss:$8 sps:$4 sm:$0xff]   ;;  %v1259_v10 = vld [vmem:[#allocation2 + $0x20] ss:$8 sps:$4 sm:$0xff]  }
  0x16   :  { %941 = vmatprep.subr.bf16.mxu0 %v1251_v5  ;;  %v1260_v11 = vld [vmem:[#allocation2 + $0x220] ss:$8 sps:$4 sm:$0xff]   ;;  %v1261_v12 = vld [vmem:[#allocation2 + $0x34] ss:$8 sps:$4 sm:$0xff]   ;;  %v1265_v14 = vld [vmem:[#allocation2 + $0x30] ss:$8 sps:$4 sm:$0xff]  }
  0x17   :  { %v1263_v13 = vld [vmem:[#allocation2 + $0x234] ss:$8 sps:$4 sm:$0xff]   ;;  %v1266_v15 = vld [vmem:[#allocation2 + $0x230] ss:$8 sps:$4 sm:$0xff]   ;;  %v1267_v16 = vld [vmem:[#allocation2 + $0x44] ss:$8 sps:$4 sm:$0xff]  }
  0x18   :  { %860 = vmatpush1.bf16.msra.mxu1 %v1253_v6  ;;  %v1269_v17 = vld [vmem:[#allocation2 + $0x244] ss:$8 sps:$4 sm:$0xff]   ;;  %v1271_v18 = vld [vmem:[#allocation2 + $0x40] ss:$8 sps:$4 sm:$0xff]   ;;  %v1273_v20 = vld [vmem:[#allocation2 + $0x54] ss:$8 sps:$4 sm:$0xff]  }
  0x19   :  { %942 = vmatpush1.bf16.msra.mxu0 %v1254_v7  ;;  %861 = vmatprep.subr.bf16.mxu1 %v1255_v8  ;;  %v1272_v19 = vld [vmem:[#allocation2 + $0x240] ss:$8 sps:$4 sm:$0xff]   ;;  %v1275_v21 = vld [vmem:[#allocation2 + $0x254] ss:$8 sps:$4 sm:$0xff]   ;;  %v1277_v22 = vld [vmem:[#allocation2 + $0x50] ss:$8 sps:$4 sm:$0xff]  }
  0x1a   :  { %943 = vmatprep.subr.bf16.mxu0 %v1257_v9  ;;  %v1278_v23 = vld [vmem:[#allocation2 + $0x250] ss:$8 sps:$4 sm:$0xff]   ;;  %v1279_v24 = vld [vmem:[#allocation2 + $0x64] ss:$8 sps:$4 sm:$0xff]   ;;  %v1283_v26 = vld [vmem:[#allocation2 + $0x60] ss:$8 sps:$4 sm:$0xff]  }
  0x1b   :  { %v1281_v25 = vld [vmem:[#allocation2 + $0x264] ss:$8 sps:$4 sm:$0xff]   ;;  %v1284_v27 = vld [vmem:[#allocation2 + $0x260] ss:$8 sps:$4 sm:$0xff]   ;;  %v1285_v28 = vld [vmem:[#allocation2 + $0x74] ss:$8 sps:$4 sm:$0xff]  }
  0x1c   :  { %862 = vmatpush1.bf16.msra.mxu1 %v1259_v10  ;;  %v1287_v29 = vld [vmem:[#allocation2 + $0x274] ss:$8 sps:$4 sm:$0xff]   ;;  %v1289_v30 = vld [vmem:[#allocation2 + $0x70] ss:$8 sps:$4 sm:$0xff]   ;;  %v1291_v32 = vld [vmem:[#allocation2 + $0x84] ss:$8 sps:$4 sm:$0xff]  }
  0x1d   :  { %944 = vmatpush1.bf16.msra.mxu0 %v1260_v11  ;;  %863 = vmatprep.subr.bf16.mxu1 %v1261_v12  ;;  %v1290_v31 = vld [vmem:[#allocation2 + $0x270] ss:$8 sps:$4 sm:$0xff]   ;;  %v1293_v33 = vld [vmem:[#allocation2 + $0x284] ss:$8 sps:$4 sm:$0xff]   ;;  %v1295_v34 = vld [vmem:[#allocation2 + $0x80] ss:$8 sps:$4 sm:$0xff]  }
  0x1e   :  { %945 = vmatprep.subr.bf16.mxu0 %v1263_v13  ;;  %v1296_v35 = vld [vmem:[#allocation2 + $0x280] ss:$8 sps:$4 sm:$0xff]   ;;  %v1297_v36 = vld [vmem:[#allocation2 + $0x94] ss:$8 sps:$4 sm:$0xff]   ;;  %v1301_v38 = vld [vmem:[#allocation2 + $0x90] ss:$8 sps:$4 sm:$0xff]  }
  0x1f   :  { %v1299_v37 = vld [vmem:[#allocation2 + $0x294] ss:$8 sps:$4 sm:$0xff]   ;;  %v1302_v39 = vld [vmem:[#allocation2 + $0x290] ss:$8 sps:$4 sm:$0xff]   ;;  %v1303_v40 = vld [vmem:[#allocation2 + $0xa4] ss:$8 sps:$4 sm:$0xff]  }
  0x20   :  { %864 = vmatpush1.bf16.msra.mxu1 %v1265_v14  ;;  %v1305_v41 = vld [vmem:[#allocation2 + $0x2a4] ss:$8 sps:$4 sm:$0xff]   ;;  %v1307_v42 = vld [vmem:[#allocation2 + $0xa0] ss:$8 sps:$4 sm:$0xff]   ;;  %v1462_v44 = vmov 1983009808  }
  0x21   :  { %946 = vmatpush1.bf16.msra.mxu0 %v1266_v15  ;;  %865 = vmatprep.subr.bf16.mxu1 %v1267_v16  ;;  %v1308_v43 = vld [vmem:[#allocation2 + $0x2a0] ss:$8 sps:$4 sm:$0xff]   ;;  %v41_v45 = vunpack.c.l.s4 %v1462_v44  ;;  %v1309_v47 = vld [vmem:[#allocation2 + $0xb4] ss:$8 sps:$4 sm:$0xff]   ;;  %v1313_v50 = vld [vmem:[#allocation2 + $0xb0] ss:$8 sps:$4 sm:$0xff]  }
  0x22   :  { %947 = vmatprep.subr.bf16.mxu0 %v1269_v17  ;;  %v1311_v48 = vld [vmem:[#allocation2 + $0x2b4] ss:$8 sps:$4 sm:$0xff]   ;;  %v25_v49 = vld [vmem:[%s1514_s0] sm:$0xff]  ;;  %v44_v53 = vshrl.u32 %v43_v46, 7  ;;  %v1314_v54 = vld [vmem:[#allocation2 + $0x2b0] ss:$8 sps:$4 sm:$0xff]  }
  0x23   :  { %v27_v51 = vmul.f32 255.0, %v25_v49  ;;  %v42_v52 = vunpack.c.0.s8 %v41_v45  ;;  %v26_v55 = vld [vmem:[%s1514_s0 + $0x8] sm:$0xff]  ;;  %v1321_v1 = vld [vmem:[#allocation2 + $0xd4] ss:$8 sps:$4 sm:$0xff]   ;;  %v1325_v7 = vld [vmem:[#allocation2 + $0xd0] ss:$8 sps:$4 sm:$0xff]  }
  0x24   :  { %866 = vmatpush1.bf16.msra.mxu1 %v1271_v18  ;;  %v1315_v56 = vld [vmem:[#allocation2 + $0xc4] ss:$8 sps:$4 sm:$0xff]   ;;  %v28_v59 = vmul.f32 255.0, %v26_v55  ;;  %v1319_v60 = vld [vmem:[#allocation2 + $0xc0] ss:$8 sps:$4 sm:$0xff]  }
  0x25   :  { %948 = vmatpush1.bf16.msra.mxu0 %v1272_v19  ;;  %867 = vmatprep.subr.bf16.mxu1 %v1273_v20  ;;  %v1317_v57 = vld [vmem:[#allocation2 + $0x2c4] ss:$8 sps:$4 sm:$0xff]   ;;  %v1234_v58 = vround.rtne.f32 %v27_v51  ;;  %v45_v62 = vsub.s32 %v42_v52, %v44_v53  ;;  %v1320_v0 = vld [vmem:[#allocation2 + $0x2c0] ss:$8 sps:$4 sm:$0xff]   ;;  %v1323_v2 = vld [vmem:[#allocation2 + $0x2d4] ss:$8 sps:$4 sm:$0xff]  }
  0x26   :  { %949 = vmatprep.subr.bf16.mxu0 %v1275_v21  ;;  %v1235_v63 = vround.rtne.f32 %v28_v59  ;;  %v1326_v8 = vld [vmem:[#allocation2 + $0x2d0] ss:$8 sps:$4 sm:$0xff]   ;;  %v1327_v9 = vld [vmem:[#allocation2 + $0xe4] ss:$8 sps:$4 sm:$0xff]   ;;  %v1331_v17 = vld [vmem:[#allocation2 + $0xe0] ss:$8 sps:$4 sm:$0xff]  }
  0x27   :  { %v33_v61 = vmax.f32 %v1234_v58, 0.0  ;;  %v1329_v10 = vld [vmem:[#allocation2 + $0x2e4] ss:$8 sps:$4 sm:$0xff]   ;;  %v1332_v18 = vld [vmem:[#allocation2 + $0x2e0] ss:$8 sps:$4 sm:$0xff]  }
  0x28   :  { %868 = vmatpush1.bf16.msra.mxu1 %v1277_v22  ;;  %v34_v4 = vmax.f32 %v1235_v63, 0.0  ;;  %v1333_v19 = vld [vmem:[#allocation2 + $0xf4] ss:$8 sps:$4 sm:$0xff]   ;;  %v1365_v49 = vld [vmem:[#allocation2 + $0x144] ss:$8 sps:$4 sm:$0xff]  }
  0x29   :  { %950 = vmatpush1.bf16.msra.mxu0 %v1278_v23  ;;  %869 = vmatprep.subr.bf16.mxu1 %v1279_v24  ;;  %v35_v3 = vmin.f32 %v33_v61, 255.0  ;;  %v1335_v20 = vld [vmem:[#allocation2 + $0x2f4] ss:$8 sps:$4 sm:$0xff]   ;;  %v1337_v24 = vld [vmem:[#allocation2 + $0xf0] ss:$8 sps:$4 sm:$0xff]  }
  0x2a   :  { %951 = vmatprep.subr.bf16.mxu0 %v1281_v25  ;;  %v36_v6 = vmin.f32 %v34_v4, 255.0  ;;  %v1338_v25 = vld [vmem:[#allocation2 + $0x2f0] ss:$8 sps:$4 sm:$0xff]   ;;  %v1359_v44 = vld [vmem:[#allocation2 + $0x134] ss:$8 sps:$4 sm:$0xff]  }
  0x2b   :  { %v46_v5 = vrot.slane %v35_v3, %v45_v62  ;;  %v39_v13 = vcombine.high %v35_v3, %v35_v3  ;;  %v1362_v45 = vld [vmem:[#allocation2 + $0x334] ss:$8 sps:$4 sm:$0xff]   ;;  %v1363_v51 = vld [vmem:[#allocation2 + $0x140] ss:$8 sps:$4 sm:$0xff]   ;;  %v1369_v55 = vld [vmem:[#allocation2 + $0x150] ss:$8 sps:$4 sm:$0xff]  }
  0x2c   :  { %870 = vmatpush1.bf16.msra.mxu1 %v1283_v26  ;;  %v63_v12 = vrot.slane %v36_v6, %v45_v62  ;;  %v56_v14 = vcombine.high %v36_v6, %v36_v6  ;;  %v1341_v26 = vld [vmem:[#allocation2 + $0x104] ss:$8 sps:$4 sm:$0xff]   ;;  %v1366_v52 = vld [vmem:[#allocation2 + $0x340] ss:$8 sps:$4 sm:$0xff]   ;;  %v1371_v53 = vld [vmem:[#allocation2 + $0x154] ss:$8 sps:$4 sm:$0xff]  }
  0x2d   :  { %952 = vmatpush1.bf16.msra.mxu0 %v1284_v27  ;;  %871 = vmatprep.subr.bf16.mxu1 %v1285_v28  ;;  %v54_v11 = vcombine.high %v46_v5, %v46_v5  ;;  %v1498_v22 = vrot.slane %v39_v13, %v45_v62  ;;  %v1344_v27 = vld [vmem:[#allocation2 + $0x304] ss:$8 sps:$4 sm:$0xff]   ;;  %v1375_v59 = vld [vmem:[#allocation2 + $0x160] ss:$8 sps:$4 sm:$0xff]   ;;  %v1383_v61 = vld [vmem:[#allocation2 + $0x174] ss:$8 sps:$4 sm:$0xff]  }
  0x2e   :  { %953 = vmatprep.subr.bf16.mxu0 %v1287_v29  ;;  %v71_v16 = vcombine.high %v63_v12, %v63_v12  ;;  %v1500_v23 = vrot.slane %v56_v14, %v45_v62  ;;  %v1380_v58 = vld [vmem:[#allocation2 + $0x364] ss:$8 sps:$4 sm:$0xff]   ;;  %v1386_v62 = vld [vmem:[#allocation2 + $0x374] ss:$8 sps:$4 sm:$0xff]   ;;  %v1381_v63 = vld [vmem:[#allocation2 + $0x170] ss:$8 sps:$4 sm:$0xff]  }
  0x2f   :  { %v82_v15 = vpack.c.bf16 %v54_v11, %v54_v11  ;;  %v55_v28 = vcombine.high %v1498_v22, %v1498_v22  ;;  %v1387_v3 = vld [vmem:[#allocation2 + $0x180] ss:$8 sps:$4 sm:$0xff]   ;;  %v1398_v6 = vld [vmem:[#allocation2 + $0x394] ss:$8 sps:$4 sm:$0xff]  }
  0x30   :  { %872 = vmatpush1.bf16.msra.mxu1 %v1289_v30  ;;  %v86_v21 = vpack.c.bf16 %v71_v16, %v71_v16  ;;  %v72_v29 = vcombine.high %v1500_v23, %v1500_v23  ;;  %v81_v30 = vpack.c.bf16 %v46_v5, %v46_v5  ;;  %v1390_v4 = vld [vmem:[#allocation2 + $0x380] ss:$8 sps:$4 sm:$0xff]   ;;  %v1395_v5 = vld [vmem:[#allocation2 + $0x194] ss:$8 sps:$4 sm:$0xff]   ;;  %v1408_v16 = vld [vmem:[#allocation2 + $0x3b0] ss:$8 sps:$4 sm:$0xff]  }
  0x31   :  { %954 = vmatpush1.bf16.msra.mxu0 %v1290_v31  ;;  %873 = vmatprep.subr.bf16.mxu1 %v1291_v32  ;;  %v85_v31 = vpack.c.bf16 %v63_v12, %v63_v12  ;;  %v1339_v32 = vld [vmem:[#allocation2 + $0x100] ss:$8 sps:$4 sm:$0xff]   ;;  %v1407_v13 = vld [vmem:[#allocation2 + $0x1b4] ss:$8 sps:$4 sm:$0xff]  }
  0x32   :  { %955 = vmatprep.subr.bf16.mxu0 %v1293_v33  ;;  %889 = vmatprep.mubr.bf16.mxu1 %v82_v15  ;;  %v1342_v33 = vld [vmem:[#allocation2 + $0x300] ss:$8 sps:$4 sm:$0xff]   ;;  %v1410_v14 = vld [vmem:[#allocation2 + $0x3b4] ss:$8 sps:$4 sm:$0xff]   ;;  %v1405_v15 = vld [vmem:[#allocation2 + $0x1b0] ss:$8 sps:$4 sm:$0xff]  }
  0x33   :  { %971 = vmatprep.mubr.bf16.mxu0 %v86_v21  ;;  %v1399_v11 = vld [vmem:[#allocation2 + $0x1a0] ss:$8 sps:$4 sm:$0xff]   ;;  %v1419_v21 = vld [vmem:[#allocation2 + $0x1d4] ss:$8 sps:$4 sm:$0xff]  }
  0x34   :  { %874 = vmatpush1.bf16.msra.mxu1 %v1295_v34  ;;  %v1347_v34 = vld [vmem:[#allocation2 + $0x114] ss:$8 sps:$4 sm:$0xff]   ;;  %v1402_v12 = vld [vmem:[#allocation2 + $0x3a0] ss:$8 sps:$4 sm:$0xff]  }
  0x35   :  { %956 = vmatpush1.bf16.msra.mxu0 %v1296_v35  ;;  %875 = vmatprep.subr.bf16.mxu1 %v1297_v36  ;;  %v1350_v35 = vld [vmem:[#allocation2 + $0x314] ss:$8 sps:$4 sm:$0xff]   ;;  %v84_v36 = vpack.c.bf16 %v55_v28, %v55_v28  ;;  %v1428_v28 = vld [vmem:[#allocation2 + $0x3e4] ss:$8 sps:$4 sm:$0xff]  }
  0x36   :  { %957 = vmatprep.subr.bf16.mxu0 %v1299_v37  ;;  %v88_v37 = vpack.c.bf16 %v72_v29, %v72_v29  ;;  %v1423_v29 = vld [vmem:[#allocation2 + $0x1e0] ss:$8 sps:$4 sm:$0xff]  }
  0x38   :  { %876 = vmatpush1.bf16.msra.mxu1 %v1301_v38  ;;  %v1345_v38 = vld [vmem:[#allocation2 + $0x110] ss:$8 sps:$4 sm:$0xff]  }
  0x39   :  { %958 = vmatpush1.bf16.msra.mxu0 %v1302_v39  ;;  %877 = vmatprep.subr.bf16.mxu1 %v1303_v40  ;;  %v1348_v39 = vld [vmem:[#allocation2 + $0x310] ss:$8 sps:$4 sm:$0xff]   ;;  %v1353_v40 = vld [vmem:[#allocation2 + $0x124] ss:$8 sps:$4 sm:$0xff]  }
  0x3a   :  { %959 = vmatprep.subr.bf16.mxu0 %v1305_v41  ;;  %v1356_v41 = vld [vmem:[#allocation2 + $0x324] ss:$8 sps:$4 sm:$0xff]  }
  0x3c   :  { %878 = vmatpush1.bf16.msra.mxu1 %v1307_v42  ;;  %v1351_v42 = vld [vmem:[#allocation2 + $0x120] ss:$8 sps:$4 sm:$0xff]  }
  0x3d   :  { %960 = vmatpush1.bf16.msra.mxu0 %v1308_v43  ;;  %879 = vmatprep.subr.bf16.mxu1 %v1309_v47  ;;  %v1354_v43 = vld [vmem:[#allocation2 + $0x320] ss:$8 sps:$4 sm:$0xff]   ;;  %v1357_v47 = vld [vmem:[#allocation2 + $0x130] ss:$8 sps:$4 sm:$0xff]  }
  0x3e   :  { %961 = vmatprep.subr.bf16.mxu0 %v1311_v48  ;;  %v1360_v48 = vld [vmem:[#allocation2 + $0x330] ss:$8 sps:$4 sm:$0xff]  }
  0x40   :  { %880 = vmatpush1.bf16.msra.mxu1 %v1313_v50  ;;  %v1368_v50 = vld [vmem:[#allocation2 + $0x344] ss:$8 sps:$4 sm:$0xff]  }
  0x41   :  { %962 = vmatpush1.bf16.msra.mxu0 %v1314_v54  ;;  %881 = vmatprep.subr.bf16.mxu1 %v1315_v56  ;;  %v1374_v54 = vld [vmem:[#allocation2 + $0x354] ss:$8 sps:$4 sm:$0xff]   ;;  %v1372_v56 = vld [vmem:[#allocation2 + $0x350] ss:$8 sps:$4 sm:$0xff]  }
  0x42   :  { %963 = vmatprep.subr.bf16.mxu0 %v1317_v57  ;;  %v1377_v57 = vld [vmem:[#allocation2 + $0x164] ss:$8 sps:$4 sm:$0xff]  }
  0x44   :  { %882 = vmatpush1.bf16.msra.mxu1 %v1319_v60  ;;  %v1378_v60 = vld [vmem:[#allocation2 + $0x360] ss:$8 sps:$4 sm:$0xff]  }
  0x45   :  { %964 = vmatpush1.bf16.msra.mxu0 %v1320_v0  ;;  %883 = vmatprep.subr.bf16.mxu1 %v1321_v1  ;;  %v1384_v0 = vld [vmem:[#allocation2 + $0x370] ss:$8 sps:$4 sm:$0xff]   ;;  %v1389_v1 = vld [vmem:[#allocation2 + $0x184] ss:$8 sps:$4 sm:$0xff]  }
  0x46   :  { %965 = vmatprep.subr.bf16.mxu0 %v1323_v2  ;;  %v1392_v2 = vld [vmem:[#allocation2 + $0x384] ss:$8 sps:$4 sm:$0xff]  }
  0x48   :  { %884 = vmatpush1.bf16.msra.mxu1 %v1325_v7  ;;  %v1393_v7 = vld [vmem:[#allocation2 + $0x190] ss:$8 sps:$4 sm:$0xff]  }
  0x49   :  { %966 = vmatpush1.bf16.msra.mxu0 %v1326_v8  ;;  %885 = vmatprep.subr.bf16.mxu1 %v1327_v9  ;;  %v1396_v8 = vld [vmem:[#allocation2 + $0x390] ss:$8 sps:$4 sm:$0xff]   ;;  %v1401_v9 = vld [vmem:[#allocation2 + $0x1a4] ss:$8 sps:$4 sm:$0xff]  }
  0x4a   :  { %967 = vmatprep.subr.bf16.mxu0 %v1329_v10  ;;  %v1404_v10 = vld [vmem:[#allocation2 + $0x3a4] ss:$8 sps:$4 sm:$0xff]  }
  0x4c   :  { %886 = vmatpush1.bf16.msra.mxu1 %v1331_v17  ;;  %v1413_v17 = vld [vmem:[#allocation2 + $0x1c4] ss:$8 sps:$4 sm:$0xff]  }
  0x4d   :  { %968 = vmatpush1.bf16.msra.mxu0 %v1332_v18  ;;  %887 = vmatprep.subr.bf16.mxu1 %v1333_v19  ;;  %v1416_v18 = vld [vmem:[#allocation2 + $0x3c4] ss:$8 sps:$4 sm:$0xff]   ;;  %v1411_v19 = vld [vmem:[#allocation2 + $0x1c0] ss:$8 sps:$4 sm:$0xff]  }
  0x4e   :  { %969 = vmatprep.subr.bf16.mxu0 %v1335_v20  ;;  %v1414_v20 = vld [vmem:[#allocation2 + $0x3c0] ss:$8 sps:$4 sm:$0xff]  }
  0x50   :  { %888 = vmatpush1.bf16.msra.mxu1 %v1337_v24  ;;  %v1422_v24 = vld [vmem:[#allocation2 + $0x3d4] ss:$8 sps:$4 sm:$0xff]  }
  0x51   :  { %970 = vmatpush1.bf16.msra.mxu0 %v1338_v25  ;;  %898 = vmatprep.subr.bf16.mxu1 %v1341_v26  ;;  %v1417_v25 = vld [vmem:[#allocation2 + $0x1d0] ss:$8 sps:$4 sm:$0xff]  }
  0x52   :  { %980 = vmatprep.subr.bf16.mxu0 %v1344_v27  ;;  %v1420_v26 = vld [vmem:[#allocation2 + $0x3d0] ss:$8 sps:$4 sm:$0xff]   ;;  %v1425_v27 = vld [vmem:[#allocation2 + $0x1e4] ss:$8 sps:$4 sm:$0xff]  }
  0x53   :  { %890 = vmatmul.mubr.bf16.vlgmr.msra.gmra.mrb[0].mxu1 %v81_v30  ;;  %v1426_v30 = vld [vmem:[#allocation2 + $0x3e0] ss:$8 sps:$4 sm:$0xff]  }
  0x54   :  { %972 = vmatmul.mubr.bf16.vlgmr.msra.gmra.mrb[0].mxu0 %v85_v31  ;;  %899 = vmatpush1.bf16.msra.mxu1 %v1339_v32  ;;  %v1431_v31 = vld [vmem:[#allocation2 + $0x1f4] ss:$8 sps:$4 sm:$0xff]  }
  0x55   :  { %981 = vmatpush1.bf16.msra.mxu0 %v1342_v33  ;;  %900 = vmatprep.subr.bf16.mxu1 %v1347_v34  ;;  %v1434_v32 = vld [vmem:[#allocation2 + $0x3f4] ss:$8 sps:$4 sm:$0xff]   ;;  %v1429_v33 = vld [vmem:[#allocation2 + $0x1f0] ss:$8 sps:$4 sm:$0xff]  }
  0x56   :  { %982 = vmatprep.subr.bf16.mxu0 %v1350_v35  ;;  %930 = vmatprep.mubr.bf16.mxu1 %v84_v36  ;;  %v1432_v34 = vld [vmem:[#allocation2 + $0x3f0] ss:$8 sps:$4 sm:$0xff]   ;;  %v83_v35 = vpack.c.bf16 %v1498_v22, %v1498_v22  ;;  %v87_v36 = vpack.c.bf16 %v1500_v23, %v1500_v23 }
  0x57   :  { %1012 = vmatprep.mubr.bf16.mxu0 %v88_v37  ;;  %v1028_v37 = vand.u32 127, %v43_v46 }
  0x58   :  { %901 = vmatpush1.bf16.msra.mxu1 %v1345_v38 }
  0x59   :  { %983 = vmatpush1.bf16.msra.mxu0 %v1348_v39  ;;  %902 = vmatprep.subr.bf16.mxu1 %v1353_v40  ;;  %v1029_v38 = vadd.s32 128, %v1028_v37  ;;  %v1034_v39 = vand.u32 7, %v1028_v37 }
  0x5a   :  { %984 = vmatprep.subr.bf16.mxu0 %v1356_v41 }
  0x5b   :  { %v1041_v40 = vand.u32 7, %v1029_v38  ;;  %vm1060_vm0 = vcmp.eq.s32.totalorder %v1034_v39, 1  ;;  %vm1062_vm1 = vcmp.eq.s32.totalorder %v1034_v39, 3  ;;  %vm1054_vm4 = vcmp.eq.s32.totalorder %v1034_v39, 0 }
  0x5c   :  { %903 = vmatpush1.bf16.msra.mxu1 %v1351_v42  ;;  %vm1056_vm5 = vcmp.eq.s32.totalorder %v1034_v39, 2  ;;  %vm1064_vm6 = vmor %vm1060_vm0, %vm1062_vm1 }
  0x5d   :  { %985 = vmatpush1.bf16.msra.mxu0 %v1354_v43  ;;  %904 = vmatprep.subr.bf16.mxu1 %v1359_v44  ;;  %vm1061_vm2 = vcmp.eq.s32.totalorder %v1041_v40, 1  ;;  %vm1063_vm3 = vcmp.eq.s32.totalorder %v1041_v40, 3  ;;  %vm1055_vm7 = vcmp.eq.s32.totalorder %v1041_v40, 0  ;;  %vm1057_vm8 = vcmp.eq.s32.totalorder %v1041_v40, 2  ;;  %vm1058_vm10 = vmor %vm1054_vm4, %vm1056_vm5 }
  0x5e   :  { %986 = vmatprep.subr.bf16.mxu0 %v1362_v45  ;;  %vm1065_vm9 = vmor %vm1061_vm2, %vm1063_vm3 }
  0x5f   :  { %vm1059_vm11 = vmor %vm1055_vm7, %vm1057_vm8 }
  0x60   :  { %905 = vmatpush1.bf16.msra.mxu1 %v1357_v47 }
  0x61   :  { %987 = vmatpush1.bf16.msra.mxu0 %v1360_v48  ;;  %906 = vmatprep.subr.bf16.mxu1 %v1365_v49 }
  0x62   :  { %988 = vmatprep.subr.bf16.mxu0 %v1368_v50 }
  0x64   :  { %907 = vmatpush1.bf16.msra.mxu1 %v1363_v51 }
  0x65   :  { %989 = vmatpush1.bf16.msra.mxu0 %v1366_v52  ;;  %908 = vmatprep.subr.bf16.mxu1 %v1371_v53 }
  0x66   :  { %990 = vmatprep.subr.bf16.mxu0 %v1374_v54  ;;  %v1463_v54 = vmov 0.02  }
  0x68   :  { %909 = vmatpush1.bf16.msra.mxu1 %v1369_v55  ;;  %v1066_v55 = vsel %vm1064_vm6, 0.32, %v1463_v54 }
  0x69   :  { %991 = vmatpush1.bf16.msra.mxu0 %v1372_v56  ;;  %910 = vmatprep.subr.bf16.mxu1 %v1377_v57  ;;  %v1067_v57 = vsel %vm1065_vm9, 0.32, %v1463_v54 }
  0x6a   :  { %992 = vmatprep.subr.bf16.mxu0 %v1380_v58 }
  0x6c   :  { %911 = vmatpush1.bf16.msra.mxu1 %v1375_v59  ;;  %v1068_v59 = vsel %vm1058_vm10, 0.32, %v1066_v55 }
  0x6d   :  { %993 = vmatpush1.bf16.msra.mxu0 %v1378_v60  ;;  %912 = vmatprep.subr.bf16.mxu1 %v1383_v61 }
  0x6e   :  { %994 = vmatprep.subr.bf16.mxu0 %v1386_v62  ;;  %v1069_v62 = vsel %vm1059_vm11, 0.32, %v1067_v57 }
  0x70   :  { %913 = vmatpush1.bf16.msra.mxu1 %v1381_v63 }
  0x71   :  { %995 = vmatpush1.bf16.msra.mxu0 %v1384_v0  ;;  %914 = vmatprep.subr.bf16.mxu1 %v1389_v1 }
  0x72   :  { %996 = vmatprep.subr.bf16.mxu0 %v1392_v2 }
  0x74   :  { %915 = vmatpush1.bf16.msra.mxu1 %v1387_v3 }
  0x75   :  { %997 = vmatpush1.bf16.msra.mxu0 %v1390_v4  ;;  %916 = vmatprep.subr.bf16.mxu1 %v1395_v5 }
  0x76   :  { %998 = vmatprep.subr.bf16.mxu0 %v1398_v6 }
  0x78   :  { %917 = vmatpush1.bf16.msra.mxu1 %v1393_v7 }
  0x79   :  { %999 = vmatpush1.bf16.msra.mxu0 %v1396_v8  ;;  %918 = vmatprep.subr.bf16.mxu1 %v1401_v9 }
  0x7a   :  { %1000 = vmatprep.subr.bf16.mxu0 %v1404_v10 }
  0x7c   :  { %919 = vmatpush1.bf16.msra.mxu1 %v1399_v11 }
  0x7d   :  { %1001 = vmatpush1.bf16.msra.mxu0 %v1402_v12  ;;  %920 = vmatprep.subr.bf16.mxu1 %v1407_v13 }
  0x7e   :  { %1002 = vmatprep.subr.bf16.mxu0 %v1410_v14 }
  0x80   :  { %921 = vmatpush1.bf16.msra.mxu1 %v1405_v15 }
  0x81   :  { %1003 = vmatpush1.bf16.msra.mxu0 %v1408_v16  ;;  %922 = vmatprep.subr.bf16.mxu1 %v1413_v17 }
  0x82   :  { %1004 = vmatprep.subr.bf16.mxu0 %v1416_v18 }
  0x84   :  { %923 = vmatpush1.bf16.msra.mxu1 %v1411_v19 }
  0x85   :  { %1005 = vmatpush1.bf16.msra.mxu0 %v1414_v20  ;;  %924 = vmatprep.subr.bf16.mxu1 %v1419_v21 }
  0x86   :  { %1006 = vmatprep.subr.bf16.mxu0 %v1422_v24 }
  0x88   :  { %925 = vmatpush1.bf16.msra.mxu1 %v1417_v25 }
  0x89   :  { %1007 = vmatpush1.bf16.msra.mxu0 %v1420_v26  ;;  %926 = vmatprep.subr.bf16.mxu1 %v1425_v27 }
  0x8a   :  { %1008 = vmatprep.subr.bf16.mxu0 %v1428_v28 }
  0x8c   :  { %927 = vmatpush1.bf16.msra.mxu1 %v1423_v29 }
  0x8d   :  { %1009 = vmatpush1.bf16.msra.mxu0 %v1426_v30  ;;  %928 = vmatprep.subr.bf16.mxu1 %v1431_v31 }
  0x8e   :  { %1010 = vmatprep.subr.bf16.mxu0 %v1434_v32 }
  0x90   :  { %929 = vmatpush1.bf16.msra.mxu1 %v1429_v33 }
  0x91   :  { %1011 = vmatpush1.bf16.msra.mxu0 %v1432_v34 }
  0x93   :  { %931 = vmatmul.mubr.bf16.vlgmr.msra.gmra.mrb[0].mxu1 %v83_v35 }
  0x94   :  { %1013 = vmatmul.mubr.bf16.vlgmr.msra.gmra.mrb[0].mxu0 %v87_v36 }
 0x166   :  { %v932_v41 = vpop.f32.mrb[0].mxu1 }
 0x167   :  { %v1014_v42 = vpop.f32.mrb[0].mxu0  ;;  %v1222_v43 = vadd.f32 128.0, %v932_v41  ;;  %v934_v44 = vpop.f32.mrb[1].mxu1 }
 0x168   :  { %v1016_v45 = vpop.f32.mrb[1].mxu0  ;;  %v1224_v22 = vadd.f32 128.0, %v934_v44  ;;  %v936_v23 = vpop.f32.mrb[2].mxu1 }
 0x169   :  { %v1018_v47 = vpop.f32.mrb[2].mxu0  ;;  %v1223_v48 = vadd.f32 %v1222_v43, %v1014_v42  ;;  %v937_v49 = vpop.f32.mrb[3].mxu1 }
 0x16a   :  { %v1019_v50 = vpop.f32.mrb[3].mxu0  ;;  %v1225_v46 = vadd.f32 %v1224_v22, %v1016_v45 }
 0x16b   :  { %v1236_v51 = vround.rtne.f32 %v1223_v48 }
 0x16c   :  { %v1237_v52 = vround.rtne.f32 %v1225_v46 }
 0x16d   :  { %v1023_v53 = vmax.f32 %v1236_v51, 0.0 }
 0x16e   :  { %v1024_v56 = vmax.f32 %v1237_v52, 0.0 }
 0x16f   :  { %v1025_v58 = vmin.f32 %v1023_v53, 255.0 }
 0x170   :  { %v1026_v60 = vmin.f32 %v1024_v56, 255.0 }
 0x171   :  { %v1219_v61 = vadd.f32 -128.0, %v1025_v58 }
 0x172   :  { %v1220_v63 = vadd.f32 -128.0, %v1026_v60 }
 0x173   :  { %v1072_v0 = vmul.f32 %v1219_v61, %v1068_v59 }
 0x174   :  { %v1073_v1 = vmul.f32 %v1220_v63, %v1069_v62 }
 0x176   :  { %v1076_v2 = vcombine.low %v1072_v0, %v1073_v1 }
 0x178   :  { %1221 = vst.sshfl [vmem:[%s1516_s2] sm:$0x33 pattern:$0x76325410] %v1076_v2 }
 0x179   :  { %1090 = vsyncpa [#allocation3], 1 }

</bundles_post_ra>
